<compile_context>
chip_gen: v5e
topology: v5e:2x2
jax: 0.10.0
libtpu: 0.0.40
codegen_flags: <defaults>
</compile_context>

<pallas_src>
import jax
import jax.numpy as jnp
from jax.experimental import pallas as pl
from jax.experimental.pallas import tpu as pltpu

_NUM_CLASSES = 4
_PADDED_CLASSES = 128  # internal lane-dense logits width (padded bias = -1e30)
_TB_MAX = 2048         # max batch-tile rows (VMEM-safe incl. v7x 32 MiB scoped)


def _dcd_kernel(x_ref, w1_ref, b1_ref, w2_ref, b2_ref, w3_ref, b3_ref, o_ref):
    # x arrives f32 straight from HBM; bf16 cast happens here (hidden under DMA).
    xb = x_ref[...].astype(jnp.bfloat16)

    # fc1 + ReLU (bf16 MXU path, f32 accumulation, f32 epilogue)
    h1 = jnp.dot(xb, w1_ref[...], preferred_element_type=jnp.float32)
    h1 = jnp.maximum(h1 + b1_ref[...], 0.0)

    # fc2 + ReLU (bn1 already folded into w2/b2 on the host)
    h2 = jnp.dot(h1.astype(jnp.bfloat16), w2_ref[...],
                 preferred_element_type=jnp.float32)
    h2 = jnp.maximum(h2 + b2_ref[...], 0.0)

    # fc3 (bn2 folded; padded to 128 lane-dense classes, padded bias = -1e30)
    logits = jnp.dot(h2.astype(jnp.bfloat16), w3_ref[...],
                     preferred_element_type=jnp.float32) + b3_ref[...]

    # softmax over classes: padded classes contribute exactly 0 to the denom
    # (exp(-1e30 - m) underflows), so summing all 128 lanes is exact.
    m = jnp.max(logits, axis=-1, keepdims=True)
    e = jnp.exp(logits - m)
    denom = jnp.sum(e, axis=-1, keepdims=True)
    probs = e[:, :_NUM_CLASSES] * pl.reciprocal(denom, approx=False)

    # only the 4 real classes are written back (32x less writeback than the
    # old padded f32 slab)
    o_ref[...] = probs.astype(o_ref.dtype)


def _round_up(n, m):
    return ((n + m - 1) // m) * m


def _choose_tile(B):
    """Batch-tile rows: large tiles, >=2 grid steps when B allows (v7x 2 TCs)."""
    if B <= 16:
        return B  # single full-array tile (block dims == array dims)
    return min(_TB_MAX, _round_up(pl.cdiv(B, 2), 8))


def dcd_forward(x, params):
    """x: (B, input_features) float32 -> (B, 4) float32 softmax probabilities."""
    (w1, b1, s1, t1, w2, b2, s2, t2, w3, b3) = params
    B, F = x.shape
    H1 = w1.shape[1]
    H2 = w2.shape[1]

    # ---- fold eval-mode BN affines into the following Linear layers (exact) ----
    # (h*s + t) @ W + b  ==  h @ (s.T * W) + (t @ W + b)
    w2f = s1.reshape(H1, 1) * w2
    b2f = b2 + t1 @ w2
    w3f = s2.reshape(H2, 1) * w3
    b3f = b3 + t2 @ w3

    # ---- lane-dense fc3 (internal only): pad to 128 classes, -1e30 padded bias
    w3p = jnp.zeros((H2, _PADDED_CLASSES), jnp.float32).at[:, :_NUM_CLASSES].set(w3f)
    b3p = jnp.full((1, _PADDED_CLASSES), -1e30, jnp.float32).at[:, :_NUM_CLASSES].set(b3f)

    # ---- bf16 weights on the MXU path (x stays f32 in HBM; cast is in-kernel)
    w1b = w1.astype(jnp.bfloat16)
    w2b = w2f.astype(jnp.bfloat16)
    w3b = w3p.astype(jnp.bfloat16)

    # ---- batch tiling: TB rows per grid step, ragged last tile, no host pad ----
    TB = _choose_tile(B)
    grid = (pl.cdiv(B, TB),)

    def resident(a):
        nd = a.ndim
        return pl.BlockSpec(a.shape, lambda i, nd=nd: (0,) * nd)

    flops = 2 * B * (F * H1 + H1 * H2 + H2 * _PADDED_CLASSES)
    bytes_accessed = (x.size * 4
                      + (w1b.size + w2b.size + w3b.size) * 2
                      + (b1.size + b2f.size + b3p.size) * 4
                      + B * _NUM_CLASSES * 4)
    cost = pl.CostEstimate(flops=flops,
                           transcendentals=B * _PADDED_CLASSES,
                           bytes_accessed=bytes_accessed)

    out = pl.pallas_call(
        _dcd_kernel,
        out_shape=jax.ShapeDtypeStruct((B, _NUM_CLASSES), jnp.float32),
        grid=grid,
        in_specs=[
            pl.BlockSpec((TB, F), lambda i: (i, 0)),   # x: streamed / double-buffered
            resident(w1b), resident(b1),
            resident(w2b), resident(b2f),
            resident(w3b), resident(b3p),
        ],
        out_specs=pl.BlockSpec((TB, _NUM_CLASSES), lambda i: (i, 0)),
        compiler_params=pltpu.CompilerParams(
            dimension_semantics=("parallel",)),
        cost_estimate=cost,
    )(x, w1b, b1, w2b, b2f, w3b, b3p)

    return out


def make_params(key, input_features=128, h_features=64):
    """Deterministic synthetic parameters matching the module's shapes."""
    ks = jax.random.split(key, 8)

    def linear(kw, kb, fan_in, fan_out):
        bound = 1.0 / jnp.sqrt(fan_in)
        w = jax.random.uniform(kw, (fan_in, fan_out), jnp.float32, -bound, bound)
        b = jax.random.uniform(kb, (1, fan_out), jnp.float32, -bound, bound)
        return w, b

    w1, b1 = linear(ks[0], ks[1], input_features, h_features)
    w2, b2 = linear(ks[2], ks[3], h_features, 32)
    w3, b3 = linear(ks[4], ks[5], 32, 4)

    eps = 1e-5
    # BatchNorm1d eval mode with PyTorch defaults:
    #   gamma=1, beta=0, running_mean=0, running_var=1
    # => scale = gamma / sqrt(var + eps), shift = beta - mean * scale
    gamma1 = jnp.ones((1, h_features), jnp.float32)
    beta1 = jnp.zeros((1, h_features), jnp.float32)
    rm1 = jnp.zeros((1, h_features), jnp.float32)
    rv1 = jnp.ones((1, h_features), jnp.float32)
    s1 = gamma1 / jnp.sqrt(rv1 + eps)
    t1 = beta1 - rm1 * s1

    gamma2 = jnp.ones((1, 32), jnp.float32)
    beta2 = jnp.zeros((1, 32), jnp.float32)
    rm2 = jnp.zeros((1, 32), jnp.float32)
    rv2 = jnp.ones((1, 32), jnp.float32)
    s2 = gamma2 / jnp.sqrt(rv2 + eps)
    t2 = beta2 - rm2 * s2

    return (w1, b1, s1, t1, w2, b2, s2, t2, w3, b3)


def dcd_reference(x, params):
    """Pure-JAX f32 reference for validation (module semantics, no folding)."""
    (w1, b1, s1, t1, w2, b2, s2, t2, w3, b3) = params
    h1 = jnp.maximum(x @ w1 + b1, 0.0) * s1 + t1
    h2 = jnp.maximum(h1 @ w2 + b2, 0.0) * s2 + t2
    return jax.nn.softmax(h2 @ w3 + b3, axis=1)


if __name__ == "__main__":
    key = jax.random.PRNGKey(0)
    k_x, k_p = jax.random.split(key)

    B, F = 8, 128
    x = jax.random.normal(k_x, (B, F), jnp.float32)
    params = make_params(k_p, input_features=F, h_features=64)

    out = dcd_forward(x, params)
    out = jax.block_until_ready(out)

    ref = dcd_reference(x, params)
    assert out.shape == (B, 4)
    # bf16 matmul inputs -> looser tolerance vs the f32 reference.
    assert jnp.allclose(out, ref, atol=2e-2, rtol=0.0), "mismatch vs reference"
    assert jnp.allclose(jnp.sum(out, axis=1), 1.0, atol=1e-4), "softmax rows must sum to 1"

    print("KERNEL_OK")
</pallas_src>

<mosaic_0001>
module attributes {stable_mosaic.version = 11 : i64} {
  func.func @_dcd_kernel(%arg0: i32, %arg1: memref<8x128xf32, #tpu.memory_space<vmem>>, %arg2: memref<128x64xbf16, #tpu.memory_space<vmem>>, %arg3: memref<1x64xf32, #tpu.memory_space<vmem>>, %arg4: memref<64x32xbf16, #tpu.memory_space<vmem>>, %arg5: memref<1x32xf32, #tpu.memory_space<vmem>>, %arg6: memref<32x128xbf16, #tpu.memory_space<vmem>>, %arg7: memref<1x128xf32, #tpu.memory_space<vmem>>, %arg8: memref<8x4xf32, #tpu.memory_space<vmem>>) attributes {dimension_semantics = [#tpu.dimension_semantics<parallel>], iteration_bounds = array<i64: 1>, scalar_prefetch = 0 : i64, scratch_operands = 0 : i64, tpu.core_type = #tpu.core_type<tc>, window_params = [{transform_indices = @transform_0, window_bounds = array<i64: 8, 128>}, {pipeline_mode = #tpu.pipeline_mode<synchronous>, transform_indices = @transform_1, window_bounds = array<i64: 128, 64>}, {pipeline_mode = #tpu.pipeline_mode<synchronous>, transform_indices = @transform_2, window_bounds = array<i64: 1, 64>}, {pipeline_mode = #tpu.pipeline_mode<synchronous>, transform_indices = @transform_3, window_bounds = array<i64: 64, 32>}, {pipeline_mode = #tpu.pipeline_mode<synchronous>, transform_indices = @transform_4, window_bounds = array<i64: 1, 32>}, {pipeline_mode = #tpu.pipeline_mode<synchronous>, transform_indices = @transform_5, window_bounds = array<i64: 32, 128>}, {pipeline_mode = #tpu.pipeline_mode<synchronous>, transform_indices = @transform_6, window_bounds = array<i64: 1, 128>}, {transform_indices = @transform_7, window_bounds = array<i64: 8, 4>}]} {
    %c0 = arith.constant 0 : index
    %c0_0 = arith.constant 0 : index
    %0 = vector.load %arg1[%c0, %c0_0] : memref<8x128xf32, #tpu.memory_space<vmem>>, vector<8x128xf32>
    %1 = arith.truncf %0 : vector<8x128xf32> to vector<8x128xbf16>
    %c0_1 = arith.constant 0 : index
    %c0_2 = arith.constant 0 : index
    %2 = vector.load %arg2[%c0_1, %c0_2] : memref<128x64xbf16, #tpu.memory_space<vmem>>, vector<128x64xbf16>
    %cst = arith.constant dense<0.000000e+00> : vector<8x64xf32>
    %3 = tpu.matmul %1, %2, %cst {dimension_numbers = #tpu.dot_dimension_numbers<[1], [0], [0], [1], [0, 0, 1, 1], [], []>} : vector<8x128xbf16>, vector<128x64xbf16>, vector<8x64xf32> -> vector<8x64xf32>
    %c0_3 = arith.constant 0 : index
    %c0_4 = arith.constant 0 : index
    %4 = vector.load %arg3[%c0_3, %c0_4] : memref<1x64xf32, #tpu.memory_space<vmem>>, vector<1x64xf32>
    %5 = vector.broadcast %4 : vector<1x64xf32> to vector<8x64xf32>
    %6 = arith.addf %3, %5 : vector<8x64xf32>
    %cst_5 = arith.constant 0.000000e+00 : f32
    %7 = vector.broadcast %cst_5 : f32 to vector<8x64xf32>
    %8 = arith.maximumf %6, %7 : vector<8x64xf32>
    %9 = arith.truncf %8 : vector<8x64xf32> to vector<8x64xbf16>
    %c0_6 = arith.constant 0 : index
    %c0_7 = arith.constant 0 : index
    %10 = vector.load %arg4[%c0_6, %c0_7] : memref<64x32xbf16, #tpu.memory_space<vmem>>, vector<64x32xbf16>
    %cst_8 = arith.constant dense<0.000000e+00> : vector<8x32xf32>
    %11 = tpu.matmul %9, %10, %cst_8 {dimension_numbers = #tpu.dot_dimension_numbers<[1], [0], [0], [1], [0, 0, 1, 1], [], []>} : vector<8x64xbf16>, vector<64x32xbf16>, vector<8x32xf32> -> vector<8x32xf32>
    %c0_9 = arith.constant 0 : index
    %c0_10 = arith.constant 0 : index
    %12 = vector.load %arg5[%c0_9, %c0_10] : memref<1x32xf32, #tpu.memory_space<vmem>>, vector<1x32xf32>
    %13 = vector.broadcast %12 : vector<1x32xf32> to vector<8x32xf32>
    %14 = arith.addf %11, %13 : vector<8x32xf32>
    %cst_11 = arith.constant 0.000000e+00 : f32
    %15 = vector.broadcast %cst_11 : f32 to vector<8x32xf32>
    %16 = arith.maximumf %14, %15 : vector<8x32xf32>
    %17 = arith.truncf %16 : vector<8x32xf32> to vector<8x32xbf16>
    %c0_12 = arith.constant 0 : index
    %c0_13 = arith.constant 0 : index
    %18 = vector.load %arg6[%c0_12, %c0_13] : memref<32x128xbf16, #tpu.memory_space<vmem>>, vector<32x128xbf16>
    %cst_14 = arith.constant dense<0.000000e+00> : vector<8x128xf32>
    %19 = tpu.matmul %17, %18, %cst_14 {dimension_numbers = #tpu.dot_dimension_numbers<[1], [0], [0], [1], [0, 0, 1, 1], [], []>} : vector<8x32xbf16>, vector<32x128xbf16>, vector<8x128xf32> -> vector<8x128xf32>
    %c0_15 = arith.constant 0 : index
    %c0_16 = arith.constant 0 : index
    %20 = vector.load %arg7[%c0_15, %c0_16] : memref<1x128xf32, #tpu.memory_space<vmem>>, vector<1x128xf32>
    %21 = vector.broadcast %20 : vector<1x128xf32> to vector<8x128xf32>
    %22 = arith.addf %19, %21 : vector<8x128xf32>
    %cst_17 = arith.constant dense<0xFF800000> : vector<8xf32>
    %23 = vector.multi_reduction <maximumf>, %22, %cst_17 [1] : vector<8x128xf32> to vector<8xf32>
    %24 = vector.shape_cast %23 : vector<8xf32> to vector<8x1xf32>
    %25 = vector.broadcast %24 : vector<8x1xf32> to vector<8x128xf32>
    %26 = arith.subf %22, %25 : vector<8x128xf32>
    %27 = math.exp %26 : vector<8x128xf32>
    %cst_18 = arith.constant dense<0.000000e+00> : vector<8xf32>
    %28 = vector.multi_reduction <add>, %27, %cst_18 [1] : vector<8x128xf32> to vector<8xf32>
    %29 = vector.shape_cast %28 : vector<8xf32> to vector<8x1xf32>
    %30 = vector.extract_strided_slice %27 {offsets = [0, 0], sizes = [8, 4], strides = [1, 1]} : vector<8x128xf32> to vector<8x4xf32>
    %31 = tpu.reciprocal %29 : vector<8x1xf32> -> vector<8x1xf32>
    %32 = vector.broadcast %31 : vector<8x1xf32> to vector<8x4xf32>
    %33 = arith.mulf %30, %32 : vector<8x4xf32>
    %c0_19 = arith.constant 0 : index
    %c0_20 = arith.constant 0 : index
    %34 = vector.load %arg8[%c0_19, %c0_20] : memref<8x4xf32, #tpu.memory_space<vmem>>, vector<8x4xf32>
    tpu.vector_store %arg8[%c0_19, %c0_20], %33 {strides = array<i32>} : memref<8x4xf32, #tpu.memory_space<vmem>>, vector<8x4xf32>,
    return
  }
  func.func @transform_0(%arg0: i32) -> (i32, i32) {
    %c0_i32 = arith.constant 0 : i32
    %c0_i32_0 = arith.constant 0 : i32
    return %arg0, %c0_i32 : i32, i32
  }
  func.func @transform_1(%arg0: i32) -> (i32, i32) {
    %c0_i32 = arith.constant 0 : i32
    %c0_i32_0 = arith.constant 0 : i32
    %c0_i32_1 = arith.constant 0 : i32
    return %c0_i32, %c0_i32_0 : i32, i32
  }
  func.func @transform_2(%arg0: i32) -> (i32, i32) {
    %c0_i32 = arith.constant 0 : i32
    %c0_i32_0 = arith.constant 0 : i32
    %c0_i32_1 = arith.constant 0 : i32
    return %c0_i32, %c0_i32_0 : i32, i32
  }
  func.func @transform_3(%arg0: i32) -> (i32, i32) {
    %c0_i32 = arith.constant 0 : i32
    %c0_i32_0 = arith.constant 0 : i32
    %c0_i32_1 = arith.constant 0 : i32
    return %c0_i32, %c0_i32_0 : i32, i32
  }
  func.func @transform_4(%arg0: i32) -> (i32, i32) {
    %c0_i32 = arith.constant 0 : i32
    %c0_i32_0 = arith.constant 0 : i32
    %c0_i32_1 = arith.constant 0 : i32
    return %c0_i32, %c0_i32_0 : i32, i32
  }
  func.func @transform_5(%arg0: i32) -> (i32, i32) {
    %c0_i32 = arith.constant 0 : i32
    %c0_i32_0 = arith.constant 0 : i32
    %c0_i32_1 = arith.constant 0 : i32
    return %c0_i32, %c0_i32_0 : i32, i32
  }
  func.func @transform_6(%arg0: i32) -> (i32, i32) {
    %c0_i32 = arith.constant 0 : i32
    %c0_i32_0 = arith.constant 0 : i32
    %c0_i32_1 = arith.constant 0 : i32
    return %c0_i32, %c0_i32_0 : i32, i32
  }
  func.func @transform_7(%arg0: i32) -> (i32, i32) {
    %c0_i32 = arith.constant 0 : i32
    %c0_i32_0 = arith.constant 0 : i32
    return %arg0, %c0_i32 : i32, i32
  }
}

</mosaic_0001>

<bundles_post_ra>
// kernel: tpu_custom_call.1
= control target key start
LH: loop header
LB: loop body
LE: loop exit
PB: predicated region body
PF: predicated region fallthrough
CT: control target
= control target key end

     0   :  { %vm148_vm0 = vcmask 523264   ;;  %vm187_vm1 = vcmask 261120   ;;  %vm226_vm6 = vcmask 31744   ;;  %s408_s1 = inlined_call_operand.vmem [shape: bf16[128,64], index: 1, kind: input, shape index: {}]   ;;  %s409_s3 = inlined_call_operand.vmem [shape: bf16[64,32], index: 3, kind: input, shape index: {}]   ;;  %s410_s2 = inlined_call_operand.vmem [shape: f32[1,64], index: 2, kind: input, shape index: {}]   ;;  %s411_s0 = inlined_call_operand.vmem [shape: f32[8,128], index: 0, kind: input, shape index: {}]   ;;  %s412_s4 = inlined_call_operand.vmem [shape: f32[1,32], index: 4, kind: input, shape index: {}]   ;;  %s413_s6 = inlined_call_operand.vmem [shape: f32[1,128], index: 6, kind: input, shape index: {}]   ;;  %s414_s5 = inlined_call_operand.vmem [shape: bf16[32,128], index: 5, kind: input, shape index: {}]   ;;  %s415_s7 = inlined_call_operand.vmem [shape: f32[8,4], index: 7, kind: output, shape index: {}]  }
   0x1   :  { %v297_v0 = vld [vmem:[%s408_s1 + $0x38] sm:$0xff]  ;;  %v296_v1 = vld [vmem:[%s408_s1 + $0x30] sm:$0xff]  ;;  %v295_v4 = vld [vmem:[%s408_s1 + $0x28] sm:$0xff] }
   0x2   :  { %97 = vmatpush.bf16.msra.mxu0 %v297_v0  ;;  %v301_v2 = vld [vmem:[%s409_s3 + $0x18] sm:$0xff]  ;;  %v300_v3 = vld [vmem:[%s409_s3 + $0x10] sm:$0xff]  ;;  %v294_v5 = vld [vmem:[%s408_s1 + $0x20] sm:$0xff] }
   0x3   :  { %156 = vmatpush.bf16.msra.mxu1 %v301_v2  ;;  %v293_v6 = vld [vmem:[%s408_s1 + $0x18] sm:$0xff]  ;;  %v292_v7 = vld [vmem:[%s408_s1 + $0x10] sm:$0xff]  ;;  %v291_v8 = vld [vmem:[%s408_s1 + $0x8] sm:$0xff] }
   0x4   :  { %v290_v9 = vld [vmem:[%s408_s1] sm:$0xff]  ;;  %v299_v12 = vld [vmem:[%s409_s3 + $0x8] sm:$0xff] }
   0x5   :  { %v27_v10 = vld [vmem:[%s411_s0] sm:$0xff]  ;;  %v303_v20 = vld [vmem:[%s414_s5 + $0x8] sm:$0xff] }
   0x6   :  { %98 = vmatpush.bf16.msra.mxu0 %v296_v1  ;;  %v28_v11 = vpack.c.bf16 %v27_v10, %v27_v10  ;;  %v298_v13 = vld [vmem:[%s409_s3] sm:$0xff]  ;;  %197 = vmatpush.bf16.msra.mxu2 %v303_v20 }
   0x7   :  { %157 = vmatpush.bf16.msra.mxu1 %v300_v3  ;;  %v304_v14 = vld [vmem:[%s410_s2] ss:$0 sm:$0xff] }
   0x8   :  { %v302_v21 = vld [vmem:[%s414_s5] sm:$0xff] }
   0x9   :  { %v305_v22 = vld [vmem:[%s412_s4] ss:$0 sm:$0xff] }
   0xa   :  { %99 = vmatpush.bf16.msra.mxu0 %v295_v4  ;;  %198 = vmatpush.bf16.msra.mxu2 %v302_v21  ;;  %v306_v28 = vld [vmem:[%s413_s6] ss:$0 sm:$0xff] }
   0xb   :  { %158 = vmatpush.bf16.msra.mxu1 %v299_v12 }
   0xe   :  { %100 = vmatpush.bf16.msra.mxu0 %v294_v5 }
   0xf   :  { %159 = vmatpush.bf16.msra.mxu1 %v298_v13 }
  0x12   :  { %101 = vmatpush.bf16.msra.mxu0 %v293_v6 }
  0x16   :  { %102 = vmatpush.bf16.msra.mxu0 %v292_v7 }
  0x1a   :  { %103 = vmatpush.bf16.msra.mxu0 %v291_v8 }
  0x1e   :  { %104 = vmatpush.bf16.msra.mxu0 %v290_v9 }
  0x21   :  { %105 = vmatmul.bf16.vlgmr.msra.gmra.mxu0 %v28_v11 }
  0x9e   :  { %v106_v15 = vpop.f32.mrf.mxu0 }
  0x9f   :  { %v107_v16 = vadd.f32 %v304_v14, %v106_v15 }
  0xa1   :  { %v110_v17 = vmax.f32 %v107_v16, 0.0 }
  0xa3   :  { %v111_v18 = vpack.c.bf16 %v110_v17, %v110_v17 }
  0xa5   :  { %280 = vmatmul.msk.bf16.vlgmr.msra.gmra.mxu1 %vm148_vm0, %v111_v18 }
  0xa6   :  { %v108_v19 = vpop.f32.mrf.mxu0 }
 0x122   :  { %v161_v23 = vpop.f32.mrf.mxu1 }
 0x123   :  { %v162_v24 = vadd.f32 %v305_v22, %v161_v23 }
 0x125   :  { %v165_v25 = vmax.f32 %v162_v24, 0.0 }
 0x127   :  { %v166_v26 = vpack.c.bf16 %v165_v25, %v165_v25 }
 0x129   :  { %289 = vmatmul.msk.bf16.vlgmr.msra.gmra.mxu2 %vm187_vm1, %v166_v26 }
 0x12a   :  { %v163_v27 = vpop.f32.mrf.mxu1 }
 0x1ac   :  { %v200_v29 = vpop.f32.mrf.mxu2 }
 0x1ad   :  { %v201_v30 = vadd.f32 %v306_v28, %v200_v29 }
 0x1af   :  { %204 = vmax.xlane.f32.xlu0 %v201_v30 }
 0x1b4   :  { %v202_v31 = vpop.f32.mrf.mxu2 }
 0x222   :  { %v205_v32 = vpop.xlane.xlu0 %204 }
 0x223   :  { %v206_v33 = vsub.f32 %v201_v30, %v205_v32 }
 0x225   :  { %v207_v34 = vmul.f32 1.442695, %v206_v33 }
 0x227   :  { %307 = vpow2.f32 %v207_v34 }
 0x22d   :  { %v308_v35 = vpop.eup %307 }
 0x22e   :  { %209 = vadd.xlane.f32.xlu0 %v308_v35 }
 0x2a1   :  { %v210_v36 = vpop.xlane.xlu0 %209 }
 0x2a2   :  { %309 = vrcp.f32 %v210_v36  ;;  %v222_v40 = vand.u32 2147483648, %v210_v36  ;;  %v220_v42 = vand.u32 2147483647, %v210_v36  ;;  %vm216_vm3 = vweird.f32 %v210_v36 }
 0x2a4   :  { %v223_v44 = vor.u32 1.1754944e-38, %v222_v40  ;;  %vm221_vm5 = vcmp.eq.f32.partialorder %v220_v42, 8.507059e+37 }
 0x2a8   :  { %v310_v37 = vpop.eup %309 }
 0x2a9   :  { %v212_v38 = vmul.f32 %v310_v37, %v210_v36  ;;  %vm217_vm2 = vweird.f32 %v310_v37 }
 0x2aa   :  { %vm218_vm4 = vmor %vm216_vm3, %vm217_vm2 }
 0x2ab   :  { %v213_v39 = vsub.f32 1.0, %v212_v38 }
 0x2ad   :  { %v214_v41 = vmul.f32 %v310_v37, %v213_v39 }
 0x2af   :  { %v215_v43 = vadd.f32 %v310_v37, %v214_v41 }
 0x2b1   :  { %v219_v45 = vsel %vm218_vm4, %v310_v37, %v215_v43 }
 0x2b2   :  { %v224_v46 = vsel %vm221_vm5, %v223_v44, %v219_v45 }
 0x2b3   :  { %v225_v47 = vmul.f32 %v308_v35, %v224_v46 }
 0x2b5   :  { %227 = vst.msk [vmem:[%s415_s7] sm:$0xff] %vm226_vm6, %v225_v47 }

</bundles_post_ra>
